<compile_context>
chip_gen: v7x
topology: tpu7x:2x2x1
jax: 0.10.0
libtpu: 0.0.40
codegen_flags: <defaults>
</compile_context>

<pallas_src>
import functools

import jax
import jax.numpy as jnp
from jax.experimental import pallas as pl
from jax.experimental.pallas import tpu as pltpu


def _lmixh_kernel(logits_ref, bias_logits_ref, hidden_ref, labels_ref,
                  wexp_ref, b_ref, out_ref, *, scaling_portion, total_b):
    tb, s = logits_ref.shape

    logits = logits_ref[...].astype(jnp.float32)            # [TB, S]
    bias_logits = bias_logits_ref[...].astype(jnp.float32)  # [TB, S]
    labels = labels_ref[...]                                  # [TB, 1] int32
    b = b_ref[0, 0]                                           # scalar (SMEM, f32)

    # learned_bias_scalar: MXU contraction over H, native dtype in, f32 acc.
    #   lin[b, s] = sum_h hidden[b, s, h] * w[h]   ==   hidden2d @ W_exp
    # (hidden tile is [TB, S*H], W_exp is [S*H, S] block-diagonal in w; the
    #  result is already lane-dense on S, so no relayout and no f32 temps.)
    lin = jnp.dot(hidden_ref[...], wexp_ref[...],
                  preferred_element_type=jnp.float32) + b     # [TB, S]
    bias_scale = jax.nn.softplus(lin)
    scaled = bias_logits * bias_scale                         # [TB, S]

    # log_softmax over classes; reuse exp() for the entropy term:
    #   entropy_row = lse - sum(p * sh) / sum(p)
    m1 = jnp.max(scaled, axis=1, keepdims=True)
    sh = scaled - m1
    p = jnp.exp(sh)
    denom = jnp.sum(p, axis=1, keepdims=True)
    lse1 = jnp.log(denom)
    inv_denom = pl.reciprocal(denom, approx=True)             # EUP slot
    ent_col = lse1 - jnp.sum(p * sh, axis=1, keepdims=True) * inv_denom  # [TB, 1]

    # Cross entropy of (logits + scaled_bias / scaling_portion) vs labels.
    z = logits + scaled * (1.0 / scaling_portion)
    m2 = jnp.max(z, axis=1, keepdims=True)
    zz = z - m2
    lse2 = jnp.log(jnp.sum(jnp.exp(zz), axis=1, keepdims=True))
    cls = jax.lax.broadcasted_iota(jnp.int32, (tb, s), 1)
    onehot = (cls == labels).astype(jnp.float32)
    ce_col = lse2 - jnp.sum(onehot * zz, axis=1, keepdims=True)           # [TB, 1]

    # Mask rows that are pure batch padding.
    row = pl.program_id(0) * tb + jax.lax.broadcasted_iota(jnp.int32, (tb, 1), 0)
    valid = row < total_b
    ce_sum = jnp.sum(jnp.where(valid, ce_col, 0.0))
    ent_sum = jnp.sum(jnp.where(valid, ent_col, 0.0))

    # Per-block partials in a lane-dense (8, 128) tile:
    #   sublane 0 -> sum of CE, sublane 1 -> sum of entropy.
    sub = jax.lax.broadcasted_iota(jnp.int32, (8, 128), 0)
    tile = jnp.where(sub == 0, ce_sum, 0.0) + jnp.where(sub == 1, ent_sum, 0.0)
    out_ref[0, :, :] = tile


def _round_up(x, m):
    return ((x + m - 1) // m) * m


def _pad_batch(x, b_pad):
    b = x.shape[0]
    if b == b_pad:
        return x
    pad = [(0, b_pad - b)] + [(0, 0)] * (x.ndim - 1)
    return jnp.pad(x, pad)


def _vmem_capacity_bytes():
    try:
        return int(pltpu.get_tpu_info().vmem_capacity_bytes)
    except Exception:
        return 64 * 1024 * 1024   # conservative fallback: assume v7x-class VMEM


def learned_mixin_h_loss(logits, bias_logits, hidden_states, labels,
                         weight, bias, *, penalty, scaling_portion=10,
                         block_b=None):
    """logits/bias_logits: [B, S]; hidden_states: [B, S, H]; labels: [B] int;
    weight: [1, H]; bias: [1].  Inputs may be f32 or bf16 (hidden goes to the
    MXU in its native dtype; f32 accumulate)."""
    B, S = logits.shape
    H = hidden_states.shape[-1]
    itemsize = jnp.dtype(hidden_states.dtype).itemsize

    # Generation-aware tile / VMEM targets.
    vmem_cap = _vmem_capacity_bytes()
    if vmem_cap <= 64 * 1024 * 1024:          # v7x-class (64 MiB VMEM, 2 TCs)
        tile_target = 10 * 1024 * 1024        # hidden bytes per block
        base_limit = 52 * 1024 * 1024
    else:                                      # v5e / v6e (128 MiB VMEM)
        tile_target = 14 * 1024 * 1024
        base_limit = 100 * 1024 * 1024

    if block_b is None:
        rows = tile_target // max(1, S * H * itemsize)
        block_b = max(8, (rows // 8) * 8)
    block_b = max(8, _round_up(block_b, 8))
    if B > 8:
        # Keep >= 2 batch blocks so the "parallel" grid axis can shard across
        # both v7x TensorCores (harmless extra grid step on 1-TC chips).
        block_b = min(block_b, _round_up((B + 1) // 2, 8))
    block_b = min(block_b, _round_up(B, 8))

    b_pad = _round_up(B, block_b)
    nb = b_pad // block_b

    # TODO(synk): for very large S*H where even an 8-row hidden tile does not
    # fit VMEM, add a class-axis grid dimension with an online-softmax
    # recurrence instead of loading the full [TB, S*H] slab.
    hidden_tile = block_b * S * H * itemsize
    vmem_limit = int(min(vmem_cap - 8 * 1024 * 1024,
                         max(base_limit, 2 * hidden_tile + 16 * 1024 * 1024)))

    logits_p = _pad_batch(logits, b_pad)
    bias_p = _pad_batch(bias_logits, b_pad)
    hidden2d = hidden_states.reshape(B, S * H)     # contiguous reshape: free
    hidden_p = _pad_batch(hidden2d, b_pad)
    labels_p = _pad_batch(labels.astype(jnp.int32).reshape(-1, 1), b_pad)

    # Expanded weight for the MXU contraction:
    #   W_exp[(s, h), s'] = delta(s, s') * w[h]  =>  hidden2d @ W_exp == lin
    eye = jnp.eye(S, dtype=jnp.float32)
    wexp = (eye[:, None, :] * weight.reshape(1, H, 1).astype(jnp.float32))
    wexp = wexp.reshape(S * H, S).astype(hidden_states.dtype)
    b2d = bias.reshape(1, 1).astype(jnp.float32)

    kernel = functools.partial(
        _lmixh_kernel,
        scaling_portion=float(scaling_portion),
        total_b=int(B),
    )

    bytes_accessed = (
        hidden_states.size * itemsize
        + logits.size * jnp.dtype(logits.dtype).itemsize
        + bias_logits.size * jnp.dtype(bias_logits.dtype).itemsize
        + labels.size * 4 + wexp.size * itemsize + nb * 8 * 128 * 4)
    cost = pl.CostEstimate(
        flops=int(2 * B * S * H * S + 24 * B * S),   # MXU contraction + VPU chain
        transcendentals=int(6 * B * S),              # softplus(exp+log), 2 softmax exp, 2 lse log
        bytes_accessed=int(bytes_accessed),
    )

    partials = pl.pallas_call(
        kernel,
        out_shape=jax.ShapeDtypeStruct((nb, 8, 128), jnp.float32),
        grid=(nb,),
        in_specs=[
            pl.BlockSpec((block_b, S), lambda i: (i, 0)),          # logits
            pl.BlockSpec((block_b, S), lambda i: (i, 0)),          # bias_logits
            # hidden viewed as [B, S*H]; on v5e, pipeline_mode=pl.Buffered(3)
            # here is the cheap knob if a profile shows exposed DMA.
            pl.BlockSpec((block_b, S * H), lambda i: (i, 0)),      # hidden_states
            pl.BlockSpec((block_b, 1), lambda i: (i, 0)),          # labels
            pl.BlockSpec((S * H, S), lambda i: (0, 0)),            # expanded Linear weight
            pl.BlockSpec(memory_space=pltpu.MemorySpace.SMEM),     # Linear bias
        ],
        out_specs=pl.BlockSpec((1, 8, 128), lambda i: (i, 0, 0)),
        compiler_params=pltpu.CompilerParams(
            dimension_semantics=("parallel",),
            vmem_limit_bytes=vmem_limit,
        ),
        cost_estimate=cost,
    )(logits_p, bias_p, hidden_p, labels_p, wexp, b2d)

    ce_total = jnp.sum(partials[:, 0, 0])
    ent_total = jnp.sum(partials[:, 1, 0])
    return ce_total / B + float(penalty) * (ent_total / B)


def _reference(logits, bias_logits, hidden_states, labels, weight, bias,
               penalty, scaling_portion=10):
    lin = jnp.einsum("bsh,h->bs", hidden_states.astype(jnp.float32),
                     weight[0].astype(jnp.float32)) + bias[0]
    bias_scale = jax.nn.softplus(lin)
    scaled = bias_logits.astype(jnp.float32) * bias_scale
    lp = jax.nn.log_softmax(scaled, axis=1)
    z = logits.astype(jnp.float32) + scaled / scaling_portion
    zlp = jax.nn.log_softmax(z, axis=1)
    ce = -jnp.take_along_axis(zlp, labels[:, None], axis=1)[:, 0]
    lmix = jnp.mean(ce)
    entropy = jnp.mean(-jnp.sum(jnp.exp(lp) * lp, axis=1))
    return lmix + penalty * entropy


if __name__ == "__main__":
    B, S, H = 14, 8, 32          # B not a block multiple -> exercises masking + 2 blocks
    penalty = 0.03
    scaling_portion = 10

    key = jax.random.PRNGKey(0)
    k1, k2, k3, k4, k5, k6 = jax.random.split(key, 6)

    logits = jax.random.normal(k1, (B, S), jnp.float32)
    bias_logits = jax.random.normal(k2, (B, S), jnp.float32)
    hidden_states = jax.random.normal(k3, (B, S, H), jnp.float32)
    labels = jax.random.randint(k4, (B,), 0, S, jnp.int32)

    # torch.nn.Linear(H, 1) default init: U(-1/sqrt(H), 1/sqrt(H))
    bound = 1.0 / (H ** 0.5)
    weight = jax.random.uniform(k5, (1, H), jnp.float32, -bound, bound)
    bias = jax.random.uniform(k6, (1,), jnp.float32, -bound, bound)

    loss = learned_mixin_h_loss(
        logits, bias_logits, hidden_states, labels, weight, bias,
        penalty=penalty, scaling_portion=scaling_portion, block_b=8)
    loss = jax.block_until_ready(loss)

    ref = _reference(logits, bias_logits, hidden_states, labels, weight, bias,
                     penalty, scaling_portion)
    # Tolerance budgets the MXU f32 contraction passes and the approximate
    # EUP reciprocal used in the entropy term.
    assert jnp.allclose(loss, ref, rtol=1e-3, atol=1e-4), (loss, ref)

    print("KERNEL_OK")
</pallas_src>

<mosaic_0001>
module attributes {stable_mosaic.version = 11 : i64} {
  func.func @_lmixh_kernel(%arg0: i32, %arg1: memref<8x8xf32, #tpu.memory_space<vmem>>, %arg2: memref<8x8xf32, #tpu.memory_space<vmem>>, %arg3: memref<8x256xf32, #tpu.memory_space<vmem>>, %arg4: memref<8x1xi32, #tpu.memory_space<vmem>>, %arg5: memref<256x8xf32, #tpu.memory_space<vmem>>, %arg6: memref<1x1xf32, #tpu.memory_space<smem>>, %arg7: memref<1x8x128xf32, #tpu.memory_space<vmem>>) attributes {dimension_semantics = [#tpu.dimension_semantics<parallel>], iteration_bounds = array<i64: 2>, scalar_prefetch = 0 : i64, scratch_operands = 0 : i64, tpu.core_type = #tpu.core_type<tc>, window_params = [{transform_indices = @transform_0, window_bounds = array<i64: 8, 8>}, {transform_indices = @transform_1, window_bounds = array<i64: 8, 8>}, {transform_indices = @transform_2, window_bounds = array<i64: 8, 256>}, {transform_indices = @transform_3, window_bounds = array<i64: 8, 1>}, {pipeline_mode = #tpu.pipeline_mode<synchronous>, transform_indices = @transform_4, window_bounds = array<i64: 256, 8>}, {transform_indices = @transform_5, window_bounds = array<i64: 1, 1>}, {transform_indices = @transform_6, window_bounds = array<i64: 1, 8, 128>}]} {
    %c0 = arith.constant 0 : index
    %c0_0 = arith.constant 0 : index
    %0 = vector.load %arg1[%c0, %c0_0] : memref<8x8xf32, #tpu.memory_space<vmem>>, vector<8x8xf32>
    %c0_1 = arith.constant 0 : index
    %c0_2 = arith.constant 0 : index
    %1 = vector.load %arg2[%c0_1, %c0_2] : memref<8x8xf32, #tpu.memory_space<vmem>>, vector<8x8xf32>
    %c0_3 = arith.constant 0 : index
    %c0_4 = arith.constant 0 : index
    %2 = vector.load %arg4[%c0_3, %c0_4] : memref<8x1xi32, #tpu.memory_space<vmem>>, vector<8x1xi32>
    %c0_5 = arith.constant 0 : index
    %c0_6 = arith.constant 0 : index
    %3 = memref.load %arg6[%c0_5, %c0_6] : memref<1x1xf32, #tpu.memory_space<smem>>
    %c0_7 = arith.constant 0 : index
    %c0_8 = arith.constant 0 : index
    %4 = vector.load %arg3[%c0_7, %c0_8] : memref<8x256xf32, #tpu.memory_space<vmem>>, vector<8x256xf32>
    %c0_9 = arith.constant 0 : index
    %c0_10 = arith.constant 0 : index
    %5 = vector.load %arg5[%c0_9, %c0_10] : memref<256x8xf32, #tpu.memory_space<vmem>>, vector<256x8xf32>
    %cst = arith.constant dense<0.000000e+00> : vector<8x8xf32>
    %6 = tpu.matmul %4, %5, %cst {dimension_numbers = #tpu.dot_dimension_numbers<[1], [0], [0], [1], [0, 0, 1, 1], [], []>} : vector<8x256xf32>, vector<256x8xf32>, vector<8x8xf32> -> vector<8x8xf32>
    %7 = vector.broadcast %3 : f32 to vector<8x8xf32>
    %8 = arith.addf %6, %7 : vector<8x8xf32>
    %cst_11 = arith.constant 0.000000e+00 : f32
    %9 = vector.broadcast %cst_11 : f32 to vector<8x8xf32>
    %10 = arith.maximumf %8, %9 : vector<8x8xf32>
    %11 = vector.broadcast %cst_11 : f32 to vector<8x8xf32>
    %12 = arith.subf %8, %11 : vector<8x8xf32>
    %13 = arith.cmpf one, %12, %12 : vector<8x8xf32>
    %14 = vector.broadcast %cst_11 : f32 to vector<8x8xf32>
    %15 = arith.addf %8, %14 : vector<8x8xf32>
    %16 = math.absf %12 : vector<8x8xf32>
    %cst_12 = arith.constant 0.000000e+00 : f32
    %17 = vector.broadcast %cst_12 : f32 to vector<8x8xf32>
    %18 = arith.subf %17, %16 : vector<8x8xf32>
    %19 = math.exp %18 : vector<8x8xf32>
    %20 = math.log1p %19 : vector<8x8xf32>
    %21 = arith.addf %10, %20 : vector<8x8xf32>
    %22 = arith.select %13, %15, %21 : vector<8x8xi1>, vector<8x8xf32>
    %23 = arith.mulf %1, %22 : vector<8x8xf32>
    %cst_13 = arith.constant dense<0xFF800000> : vector<8xf32>
    %24 = vector.multi_reduction <maximumf>, %23, %cst_13 [1] : vector<8x8xf32> to vector<8xf32>
    %25 = vector.shape_cast %24 : vector<8xf32> to vector<8x1xf32>
    %26 = vector.broadcast %25 : vector<8x1xf32> to vector<8x8xf32>
    %27 = arith.subf %23, %26 : vector<8x8xf32>
    %28 = math.exp %27 : vector<8x8xf32>
    %cst_14 = arith.constant dense<0.000000e+00> : vector<8xf32>
    %29 = vector.multi_reduction <add>, %28, %cst_14 [1] : vector<8x8xf32> to vector<8xf32>
    %30 = vector.shape_cast %29 : vector<8xf32> to vector<8x1xf32>
    %31 = math.log %30 : vector<8x1xf32>
    %32 = tpu.reciprocal %30 {approx = true} : vector<8x1xf32> -> vector<8x1xf32>
    %33 = arith.mulf %28, %27 : vector<8x8xf32>
    %cst_15 = arith.constant dense<0.000000e+00> : vector<8xf32>
    %34 = vector.multi_reduction <add>, %33, %cst_15 [1] : vector<8x8xf32> to vector<8xf32>
    %35 = vector.shape_cast %34 : vector<8xf32> to vector<8x1xf32>
    %36 = arith.mulf %35, %32 : vector<8x1xf32>
    %37 = arith.subf %31, %36 : vector<8x1xf32>
    %cst_16 = arith.constant 1.000000e-01 : f32
    %38 = vector.broadcast %cst_16 : f32 to vector<8x8xf32>
    %39 = arith.mulf %23, %38 : vector<8x8xf32>
    %40 = arith.addf %0, %39 : vector<8x8xf32>
    %cst_17 = arith.constant dense<0xFF800000> : vector<8xf32>
    %41 = vector.multi_reduction <maximumf>, %40, %cst_17 [1] : vector<8x8xf32> to vector<8xf32>
    %42 = vector.shape_cast %41 : vector<8xf32> to vector<8x1xf32>
    %43 = vector.broadcast %42 : vector<8x1xf32> to vector<8x8xf32>
    %44 = arith.subf %40, %43 : vector<8x8xf32>
    %45 = math.exp %44 : vector<8x8xf32>
    %cst_18 = arith.constant dense<0.000000e+00> : vector<8xf32>
    %46 = vector.multi_reduction <add>, %45, %cst_18 [1] : vector<8x8xf32> to vector<8xf32>
    %47 = vector.shape_cast %46 : vector<8xf32> to vector<8x1xf32>
    %48 = math.log %47 : vector<8x1xf32>
    %49 = tpu.iota {dimensions = array<i32: 1>} : vector<8x8xi32>
    %50 = vector.broadcast %2 : vector<8x1xi32> to vector<8x8xi32>
    %51 = arith.cmpi eq, %49, %50 : vector<8x8xi32>
    %52 = arith.extui %51 : vector<8x8xi1> to vector<8x8xi32>
    %53 = arith.sitofp %52 : vector<8x8xi32> to vector<8x8xf32>
    %54 = arith.mulf %53, %44 : vector<8x8xf32>
    %cst_19 = arith.constant dense<0.000000e+00> : vector<8xf32>
    %55 = vector.multi_reduction <add>, %54, %cst_19 [1] : vector<8x8xf32> to vector<8xf32>
    %56 = vector.shape_cast %55 : vector<8xf32> to vector<8x1xf32>
    %57 = arith.subf %48, %56 : vector<8x1xf32>
    %c8_i32 = arith.constant 8 : i32
    %58 = arith.muli %arg0, %c8_i32 : i32
    %59 = tpu.iota {dimensions = array<i32: 0>} : vector<8x1xi32>
    %60 = vector.broadcast %58 : i32 to vector<8x1xi32>
    %61 = arith.addi %60, %59 : vector<8x1xi32>
    %c14_i32 = arith.constant 14 : i32
    %62 = vector.broadcast %c14_i32 : i32 to vector<8x1xi32>
    %63 = arith.cmpi slt, %61, %62 : vector<8x1xi32>
    %cst_20 = arith.constant 0.000000e+00 : f32
    %64 = vector.broadcast %cst_20 : f32 to vector<8x1xf32>
    %65 = arith.select %63, %57, %64 : vector<8x1xi1>, vector<8x1xf32>
    %66 = vector.shape_cast %65 : vector<8x1xf32> to vector<1x8x1xf32>
    %cst_21 = arith.constant dense<0.000000e+00> : vector<1xf32>
    %67 = vector.multi_reduction <add>, %66, %cst_21 [1, 2] : vector<1x8x1xf32> to vector<1xf32>
    %68 = vector.shape_cast %67 : vector<1xf32> to vector<1x1x1xf32>
    %69 = vector.extract %68[0, 0, 0] : f32 from vector<1x1x1xf32>
    %cst_22 = arith.constant 0.000000e+00 : f32
    %70 = vector.broadcast %cst_22 : f32 to vector<8x1xf32>
    %71 = arith.select %63, %37, %70 : vector<8x1xi1>, vector<8x1xf32>
    %72 = vector.shape_cast %71 : vector<8x1xf32> to vector<1x8x1xf32>
    %cst_23 = arith.constant dense<0.000000e+00> : vector<1xf32>
    %73 = vector.multi_reduction <add>, %72, %cst_23 [1, 2] : vector<1x8x1xf32> to vector<1xf32>
    %74 = vector.shape_cast %73 : vector<1xf32> to vector<1x1x1xf32>
    %75 = vector.extract %74[0, 0, 0] : f32 from vector<1x1x1xf32>
    %76 = tpu.iota {dimensions = array<i32: 0>} : vector<8x128xi32>
    %c0_i32 = arith.constant 0 : i32
    %77 = vector.broadcast %c0_i32 : i32 to vector<8x128xi32>
    %78 = arith.cmpi eq, %76, %77 : vector<8x128xi32>
    %cst_24 = arith.constant 0.000000e+00 : f32
    %79 = vector.broadcast %69 : f32 to vector<8x128xf32>
    %80 = vector.broadcast %cst_24 : f32 to vector<8x128xf32>
    %81 = arith.select %78, %79, %80 : vector<8x128xi1>, vector<8x128xf32>
    %c1_i32 = arith.constant 1 : i32
    %82 = vector.broadcast %c1_i32 : i32 to vector<8x128xi32>
    %83 = arith.cmpi eq, %76, %82 : vector<8x128xi32>
    %cst_25 = arith.constant 0.000000e+00 : f32
    %84 = vector.broadcast %75 : f32 to vector<8x128xf32>
    %85 = vector.broadcast %cst_25 : f32 to vector<8x128xf32>
    %86 = arith.select %83, %84, %85 : vector<8x128xi1>, vector<8x128xf32>
    %87 = arith.addf %81, %86 : vector<8x128xf32>
    %c0_26 = arith.constant 0 : index
    %c0_27 = arith.constant 0 : index
    %c0_28 = arith.constant 0 : index
    %88 = vector.load %arg7[%c0_26, %c0_27, %c0_28] : memref<1x8x128xf32, #tpu.memory_space<vmem>>, vector<1x8x128xf32>
    %89 = vector.shape_cast %88 : vector<1x8x128xf32> to vector<8x128xf32>
    %90 = vector.shape_cast %87 : vector<8x128xf32> to vector<1x8x128xf32>
    tpu.vector_store %arg7[%c0_26, %c0_27, %c0_28], %90 {strides = array<i32>} : memref<1x8x128xf32, #tpu.memory_space<vmem>>, vector<1x8x128xf32>,
    return
  }
  func.func @transform_0(%arg0: i32) -> (i32, i32) {
    %c0_i32 = arith.constant 0 : i32
    %c0_i32_0 = arith.constant 0 : i32
    return %arg0, %c0_i32 : i32, i32
  }
  func.func @transform_1(%arg0: i32) -> (i32, i32) {
    %c0_i32 = arith.constant 0 : i32
    %c0_i32_0 = arith.constant 0 : i32
    return %arg0, %c0_i32 : i32, i32
  }
  func.func @transform_2(%arg0: i32) -> (i32, i32) {
    %c0_i32 = arith.constant 0 : i32
    %c0_i32_0 = arith.constant 0 : i32
    return %arg0, %c0_i32 : i32, i32
  }
  func.func @transform_3(%arg0: i32) -> (i32, i32) {
    %c0_i32 = arith.constant 0 : i32
    %c0_i32_0 = arith.constant 0 : i32
    return %arg0, %c0_i32 : i32, i32
  }
  func.func @transform_4(%arg0: i32) -> (i32, i32) {
    %c0_i32 = arith.constant 0 : i32
    %c0_i32_0 = arith.constant 0 : i32
    %c0_i32_1 = arith.constant 0 : i32
    return %c0_i32, %c0_i32_0 : i32, i32
  }
  func.func @transform_5(%arg0: i32) -> (i32, i32) {
    %c0_i32 = arith.constant 0 : i32
    %c0_i32_0 = arith.constant 0 : i32
    %c0_i32_1 = arith.constant 0 : i32
    return %c0_i32, %c0_i32_0 : i32, i32
  }
  func.func @transform_6(%arg0: i32) -> (i32, i32, i32) {
    %c0_i32 = arith.constant 0 : i32
    %c0_i32_0 = arith.constant 0 : i32
    %c0_i32_1 = arith.constant 0 : i32
    return %arg0, %c0_i32, %c0_i32_0 : i32, i32, i32
  }
}

</mosaic_0001>

<bundles_post_ra>
// kernel: tpu_custom_call.1
= control target key start
LH: loop header
LB: loop body
LE: loop exit
PB: predicated region body
PF: predicated region fallthrough
CT: control target
= control target key end

     0   :  { %s1096_s0 = inlined_call_operand.vmem [shape: f32[16,8], index: 0, kind: input, shape index: {}]   ;;  %s1097_s1 = inlined_call_operand.vmem [shape: f32[16,8], index: 1, kind: input, shape index: {}]   ;;  %s1098_s2 = inlined_call_operand.vmem [shape: f32[16,256], index: 2, kind: input, shape index: {}]   ;;  %s1099_s3 = inlined_call_operand.vmem [shape: s32[16,1], index: 3, kind: input, shape index: {}]   ;;  %s1100_s4 = inlined_call_operand.vmem [shape: f32[256,8], index: 4, kind: input, shape index: {}]   ;;  %s1101_s5 = inlined_call_operand.<no memory space> [shape: f32[1,1], index: 5, kind: input, shape index: {}]   ;;  %s1102_s6 = inlined_call_operand.hbm [shape: f32[2,8,128], index: 6, kind: output, shape index: {}]  }
   0x1   :  { %11 = sst [smem:[#allocation2]] %s1101_s5 }
   0x2   :  { %12 = vsyncpa [#allocation4], 0 }
   0x3   :  { %14 = vsyncpa [#allocation4 + $0x1], 0  ;;  %s871_s23 = smov 0   ;;  %s873_s24 = smov 0  }
   0x4   :  { %s875_s25 = smov 0   ;;  %s877_s26 = smov 0  }
   0x5 LB: > { %s892_s5 = sadd.s32 4294967295, %s828_s26   ;;  %s621_s27 = sadd.s32 4294967294, %s828_s26   ;;  %s828_s26 = sphi %s877_s26, %s1108_s26   ;;  %s824_s25 = sphi %s875_s25, %s1107_s25   ;;  %s820_s24 = sphi %s873_s24, %s1106_s24   ;;  %s816_s23 = sphi %s871_s23, %s1105_s23  }
   0x6   : > { %s896_s28 = sadd.s32 1, %s828_s26   ;;  %s173_s29 = sadd.s32 1, %s824_s25 }
   0x7   : > { %s170_s30 = ssub.s32 %s828_s26, %s896_s28  ;;  %p183_p0 = scmp.ne.s32.totalorder %s824_s25, %s820_s24 }
   0x8   : > { %p171_p1 = scmp.eq.s32.totalorder %s170_s30, 0  ;;  %p184_p2 = scmp.eq.s32.totalorder %s892_s5, 1 }
   0x9   : > { %p189_p3 = scmp.ne.s32.totalorder %s820_s24, %s816_s23  ;;  %p190_p4 = scmp.eq.s32.totalorder %s621_s27, 1 }
   0xa   : > { %s907_s7 = scalar_select %p171_p1, %s824_s25, %s173_s29  }
   0xb   : > { %p909_p5 = por %p184_p2, %p183_p0  ;;  %p913_p6 = por %p190_p4, %p189_p3 }
   0xc   : > { %p624_p7 = scmp.ge.s32.totalorder %s828_s26, 1  ;;  %p243_p8 = scmp.lt.s32.totalorder %s828_s26, 3 }
   0xe   : > { %p244_p9 = pnand %p624_p7, %p243_p8 }
   0xf   : > { %v324_v0 = vld [vmem:[%s1100_s4 + $0x80] sm:$0xff] (!%p244_p9)  ;;  %v325_v1 = vld [vmem:[%s1100_s4 + $0x88] sm:$0xff] (!%p244_p9)  ;;  %p285_p10 = scmp.lt.s32.totalorder (!%p244_p9), %s892_s5, 1  ;;  %v326_v5 = vld [vmem:[%s1100_s4 + $0x90] sm:$0xff] (!%p244_p9)  ;;  %v830_v50 = vmov (!%p244_p9), 0   ;;  %s305_s29 = sld [smem:[#allocation2]] (!%p244_p9) }
  0x10   : > { %247 = sbr.rel (%p244_p9) target bundleno = 853 (0x355), region = 44  ;;  %v308_v2 = vld [vmem:[%s1100_s4] sm:$0xff] (!%p244_p9)  ;;  %v673_v3 = vpack.c.bf16 (!%p244_p9), %v325_v1, %v324_v0  ;;  %v309_v4 = vld [vmem:[%s1100_s4 + $0x8] sm:$0xff] (!%p244_p9)  ;;  %v327_v6 = vld [vmem:[%s1100_s4 + $0x98] sm:$0xff] (!%p244_p9)  ;;  %750 = vset.pattern.permute.xlu1 (!%p244_p9), %v830_v50  ;;  %751 = vset.pattern.permute.xlu0 (!%p244_p9), %v830_v50  ;;  %vm430_vm2 = vcmask (!%p244_p9), 64512   ;;  %s632_s16 = sshll.u32 (!%p244_p9), %s892_s5, 3 }
  0x11   : > { %v675_v7 = vpack.c.bf16 (!%p244_p9), %v309_v4, %v308_v2  ;;  %v677_v8 = vpack.c.bf16 (!%p244_p9), %v327_v6, %v326_v5  ;;  %v310_v9 = vld [vmem:[%s1100_s4 + $0x10] sm:$0xff] (!%p244_p9)  ;;  %v311_v10 = vld [vmem:[%s1100_s4 + $0x18] sm:$0xff] (!%p244_p9)  ;;  %v328_v11 = vld [vmem:[%s1100_s4 + $0xa0] sm:$0xff] (!%p244_p9)  ;;  %vm482_vm5 = vcmask (!%p244_p9), 7168   ;;  %s282_s17 = sand.u32 (!%p244_p9), 1, %s820_s24  }
  0x12   : > { %674 = vmatprep.subr.bf16.mxu0 (!%p244_p9), %v673_v3  ;;  %v329_v12 = vld [vmem:[%s1100_s4 + $0xa8] sm:$0xff] (!%p244_p9)  ;;  %v679_v13 = vpack.c.bf16 (!%p244_p9), %v311_v10, %v310_v9  ;;  %v312_v15 = vld [vmem:[%s1100_s4 + $0x20] sm:$0xff] (!%p244_p9)  ;;  %v330_v17 = vld [vmem:[%s1100_s4 + $0xb0] sm:$0xff] (!%p244_p9)  ;;  %s625_s18 = sshll.u32 (!%p244_p9), %s282_s17, 3 }
  0x13   : > { %676 = vmatpush3.bf16.msra.mxu0 (!%p244_p9), %v675_v7  ;;  %v681_v14 = vpack.c.bf16 (!%p244_p9), %v329_v12, %v328_v11  ;;  %v313_v16 = vld [vmem:[%s1100_s4 + $0x28] sm:$0xff] (!%p244_p9)  ;;  %v331_v18 = vld [vmem:[%s1100_s4 + $0xb8] sm:$0xff] (!%p244_p9)  ;;  %v314_v21 = vld [vmem:[%s1100_s4 + $0x30] sm:$0xff] (!%p244_p9)  ;;  %s284_s21 = scalar_lea.vmem (!%p244_p9), [#allocation3], %s625_s18 }
  0x14   : > { %678 = vmatprep.subr.bf16.mxu0 (!%p244_p9), %v677_v8  ;;  %v683_v19 = vpack.c.bf16 (!%p244_p9), %v313_v16, %v312_v15  ;;  %v685_v20 = vpack.c.bf16 (!%p244_p9), %v331_v18, %v330_v17  ;;  %v315_v22 = vld [vmem:[%s1100_s4 + $0x38] sm:$0xff] (!%p244_p9)  ;;  %v332_v23 = vld [vmem:[%s1100_s4 + $0xc0] sm:$0xff] (!%p244_p9)  ;;  %v333_v24 = vld [vmem:[%s1100_s4 + $0xc8] sm:$0xff] (!%p244_p9)  ;;  %s526_s22 = sshll.u32 (!%p244_p9), %s284_s21, 4  ;;  %s1056_s22 = int_to_ptr.vmem [resolvable:$true] %s526_s22 }
  0x15   : > { %v687_v26 = vpack.c.bf16 (!%p244_p9), %v315_v22, %v314_v21  ;;  %v689_v27 = vpack.c.bf16 (!%p244_p9), %v333_v24, %v332_v23  ;;  %v316_v28 = vld [vmem:[%s1100_s4 + $0x40] sm:$0xff] (!%p244_p9)  ;;  %v317_v29 = vld [vmem:[%s1100_s4 + $0x48] sm:$0xff] (!%p244_p9)  ;;  %v334_v30 = vld [vmem:[%s1100_s4 + $0xd0] sm:$0xff] (!%p244_p9)  ;;  %v340_v53 = vstv (!%p244_p9), %s305_s29  ;;  %v462_v21 = vlaneseq (!%p244_p9) }
  0x16   : > { %v335_v31 = vld [vmem:[%s1100_s4 + $0xd8] sm:$0xff] (!%p244_p9)  ;;  %v691_v32 = vpack.c.bf16 (!%p244_p9), %v317_v29, %v316_v28  ;;  %v318_v34 = vld [vmem:[%s1100_s4 + $0x50] sm:$0xff] (!%p244_p9)  ;;  %v336_v36 = vld [vmem:[%s1100_s4 + $0xe0] sm:$0xff] (!%p244_p9)  ;;  %v831_v29 = vmov (!%p244_p9), 0.0  }
  0x17   : > { %s948_s12 = scalar_select %p285_p10, %s892_s5, 1  ;;  %680 = vmatpush3.bf16.msra.mxu0 %v679_v13  ;;  %v693_v33 = vpack.c.bf16 %v335_v31, %v334_v30  ;;  %v319_v35 = vld [vmem:[%s1100_s4 + $0x58] sm:$0xff]  ;;  %v337_v37 = vld [vmem:[%s1100_s4 + $0xe8] sm:$0xff]  ;;  %v320_v40 = vld [vmem:[%s1100_s4 + $0x60] sm:$0xff]  ;;  %v463_v22 = vand.u32 127, %v462_v21 }
  0x18   : > { %682 = vmatprep.subr.bf16.mxu0 %v681_v14  ;;  %v695_v38 = vpack.c.bf16 %v319_v35, %v318_v34  ;;  %v697_v39 = vpack.c.bf16 %v337_v37, %v336_v36  ;;  %v321_v41 = vld [vmem:[%s1100_s4 + $0x68] sm:$0xff]  ;;  %v338_v42 = vld [vmem:[%s1100_s4 + $0xf0] sm:$0xff]  ;;  %v339_v43 = vld [vmem:[%s1100_s4 + $0xf8] sm:$0xff]  ;;  %v477_v37 = vshrl.u32 %v462_v21, 7 }
  0x19   : > { %s637_s15 = sshll.u32 %s948_s12, 4  ;;  %v699_v44 = vpack.c.bf16 %v321_v41, %v320_v40  ;;  %v701_v45 = vpack.c.bf16 %v339_v43, %v338_v42  ;;  %v322_v46 = vld [vmem:[%s1100_s4 + $0x70] sm:$0xff]  ;;  %v323_v47 = vld [vmem:[%s1100_s4 + $0x78] sm:$0xff]  ;;  %s1028_s20 = sshll.u32 %s948_s12, 3  ;;  %v478_v40 = vstv %s632_s16 }
  0x1a   : > { %s969_s10 = scalar_lea.vmem %s1098_s2, %s637_s15  ;;  %v703_v48 = vpack.c.bf16 %v323_v47, %v322_v46  ;;  %s301_s27 = scalar_lea.vmem %s1099_s3, %s1028_s20  ;;  %vm504_vm6 = vcmp.eq.s32.totalorder %v477_v37, 0  ;;  %vm507_vm7 = vcmp.eq.s32.totalorder %v477_v37, 1 }
  0x1b   : > { %v307_v25 = vld [vmem:[%s969_s10 + $0x8] sm:$0xff]  ;;  %684 = vmatpush3.bf16.msra.mxu0 %v683_v19  ;;  %v306_v49 = vld [vmem:[%s969_s10] sm:$0xff]  ;;  %s292_s30 = scalar_lea.vmem %s1097_s1, %s1028_s20  ;;  %s288_s14 = scalar_lea.vmem %s1096_s0, %s1028_s20 }
  0x1c   : > { %405 = vmatprep.mubr.f32.mxu0 %v307_v25  ;;  %686 = vmatprep.subr.bf16.mxu0 %v685_v20  ;;  %v304_v51 = vld [vmem:[%s301_s27] sm:$0xff]  ;;  %s634_s15 = sshll.u32 %s892_s5, 7  ;;  %s513_s10 = scalar_lea.sflag [#allocation4], %s282_s17 }
  0x1d   : > { %465 = vperm.xlu1 %750, %v304_v51   ;;  %v303_v6 = vld [vmem:[%s292_s30] sm:$0xff]  ;;  %s1054_s12 = scalar_lea.hbm %s1102_s6, %s634_s15  ;;  %s766_s5 = scalar_lea.vmem %s1056_s22, 128 }
  0x1e   : > { %v302_v10 = vld [vmem:[%s288_s14] sm:$0xff]  ;;  %p767_p11 = scmp.ne.s32.totalorder %s1056_s22, %s766_s5  ;;  %s832_s30 = smov [#allocation3]  }
  0x1f   : > { %688 = vmatpush3.bf16.msra.mxu0 %v687_v26  ;;  %s770_s11 = sshll.u32 %s832_s30, 4  ;;  %s771_s11 = int_to_ptr.vmem [resolvable:$false] %s770_s11 }
  0x20   : > { %690 = vmatprep.subr.bf16.mxu0 %v689_v27  ;;  %p768_p12 = pnand %p767_p11, %p909_p5  ;;  %s772_s13 = scalar_lea.vmem %s771_s11, 256 }
  0x21   : > { %p773_p0 = scmp.lt.s32.totalorder %s1056_s22, %s771_s11  ;;  %p774_p1 = scmp.lt.s32.totalorder %s772_s13, %s766_s5 }
  0x22   : > { %p769_p13 = pneg %p768_p12 }
  0x23   : > { %692 = vmatpush3.bf16.msra.mxu0 %v691_v32  ;;  %p775_p2 = por %p774_p1, %p773_p0 }
  0x24   : > { %694 = vmatprep.subr.bf16.mxu0 %v693_v33 }
  0x25   : > { %p776_p3 = pnand %p775_p2, %p769_p13 }
  0x27   : > { %696 = vmatpush3.bf16.msra.mxu0 %v695_v38 }
  0x28   : > { %698 = vmatprep.subr.bf16.mxu0 %v697_v39 }
  0x2b   : > { %700 = vmatpush3.bf16.msra.mxu0 %v699_v44  ;;  %v479_v44 = vadd.s32 %v478_v40, %v477_v37 }
  0x2c   : > { %702 = vmatprep.subr.bf16.mxu0 %v701_v45 }
  0x2d   : > { %vm480_vm4 = vcmp.lt.s32.totalorder %v479_v44, 14 }
  0x2f   : > { %704 = vmatpush3.bf16.msra.mxu0 %v703_v48 }
  0x32   : > { %406 = vmatmul.mubr.f32.vlgmr.msra.gmra.mrb[0].mxu0 %v306_v49 }
  0x9c   : > { %v466_v24 = vpop.permute.xlu1 %465 }
  0x9d   : > { %vm467_vm3 = vcmp.eq.s32.totalorder %v463_v22, %v466_v24 }
  0x9e   : > { %v631_v30 = vsel %vm467_vm3, 1.0, %v831_v29 }
 0x105   : > { %v670_v52 = vpop.f32.mrb[0].mxu0 }
 0x106   : > { %v671_v54 = vpop.f32.mrb[1].mxu0 }
 0x107   : > { %v672_v55 = vadd.f32 %v671_v54, %v670_v52 }
 0x109   : > { %v408_v56 = vadd.f32 %v672_v55, %v340_v53 }
 0x10b   : > { %v414_v57 = vand.u32 2147483647, %v408_v56  ;;  %v411_v4 = vmax.f32 %v408_v56, 0.0  ;;  %vm412_vm1 = vcmp.ne.f32.partialorder %v408_v56, %v408_v56 }
 0x10d   : > { %v415_v58 = vsub.f32 0.0, %v414_v57 }
 0x10f   : > { %v416_v59 = vmul.f32 1.442695, %v415_v58 }
 0x111   : > { %752 = vpow2.f32 %v416_v59 }
 0x11b   : > { %v753_v60 = vpop.eup %752 }
 0x11c   : > { %v418_v61 = vadd.f32 1.0, %v753_v60  ;;  %v421_v62 = vmul.f32 -0.5, %v753_v60  ;;  %v424_v0 = vand.u32 2147483647, %v753_v60 }
 0x11e   : > { %754 = vlog2.f32 %v418_v61  ;;  %v422_v63 = vadd.f32 1.0, %v421_v62  ;;  %vm425_vm0 = vcmp.lt.f32.partialorder %v424_v0, 0.0004427343 }
 0x120   : > { %v423_v3 = vmul.f32 %v753_v60, %v422_v63 }
 0x128   : > { %v755_v1 = vpop.eup %754 }
 0x129   : > { %v420_v2 = vmul.f32 0.6931472, %v755_v1 }
 0x12b   : > { %v426_v5 = vsel %vm425_vm0, %v423_v3, %v420_v2 }
 0x12c   : > { %v427_v7 = vadd.f32 %v426_v5, %v411_v4 }
 0x12e   : > { %v428_v8 = vsel %vm412_vm1, %v408_v56, %v427_v7 }
 0x12f   : > { %v429_v9 = vmul.f32 %v428_v8, %v303_v6 }
 0x131   : > { %v431_v11 = vsel %vm430_vm2, %v429_v9, -inf  ;;  %v449_v12 = vmul.f32 0.1, %v429_v9 }
 0x132   : > { %432 = vmax.xlane.f32.xlu0 %v431_v11 }
 0x133   : > { %v450_v13 = vadd.f32 %v449_v12, %v302_v10 }
 0x135   : > { %v451_v14 = vsel %vm430_vm2, %v450_v13, -inf }
 0x136   : > { %452 = vmax.xlane.f32.xlu0 %v451_v14 }
 0x1bf   : > { %v433_v15 = vpop.xlane.xlu0 %432 }
 0x1c0   : > { %v434_v16 = vsub.f32 %v429_v9, %v433_v15 }
 0x1c2   : > { %v435_v17 = vmul.f32 1.442695, %v434_v16 }
 0x1c3   : > { %v453_v18 = vpop.xlane.xlu0 %452 }
 0x1c4   : > { %756 = vpow2.f32 %v435_v17  ;;  %v454_v19 = vsub.f32 %v450_v13, %v453_v18 }
 0x1c6   : > { %v455_v20 = vmul.f32 1.442695, %v454_v19  ;;  %v470_v32 = vmul.f32 %v631_v30, %v454_v19 }
 0x1c8   : > { %758 = vpow2.f32 %v455_v20  ;;  %v471_v33 = vsel %vm430_vm2, %v470_v32, 0.0 }
 0x1ce   : > { %v757_v23 = vpop.eup %756 }
 0x1cf   : > { %v437_v25 = vsel %vm430_vm2, %v757_v23, 0.0  ;;  %v443_v28 = vmul.f32 %v757_v23, %v434_v16 }
 0x1d0   : > { %438 = vadd.xlane.f32.xlu1 %v437_v25 }
 0x1d1   : > { %v444_v31 = vsel %vm430_vm2, %v443_v28, 0.0 }
 0x1d2   : > { %v759_v26 = vpop.eup %758 }
 0x1d3   : > { %v457_v27 = vsel %vm430_vm2, %v759_v26, 0.0 }
 0x1d4   : > { %458 = vadd.xlane.f32.xlu0 %v457_v27 }
 0x1d8   : > { %445 = vadd.xlane.f32.xlu0 %v444_v31 }
 0x1dc   : > { %472 = vadd.xlane.f32.xlu0 %v471_v33 }
 0x25d   : > { %v439_v34 = vpop.xlane.xlu1 %438 }
 0x25e   : > { %760 = vlog2.f32 %v439_v34 }
 0x25f   : > { %762 = vrcp.f32 %v439_v34 }
 0x261   : > { %v459_v35 = vpop.xlane.xlu0 %458 }
 0x262   : > { %764 = vlog2.f32 %v459_v35 }
 0x265   : > { %v446_v38 = vpop.xlane.xlu0 %445 }
 0x268   : > { %v761_v36 = vpop.eup %760 }
 0x269   : > { %v763_v39 = vpop.eup %762  ;;  %v441_v41 = vmul.f32 0.6931472, %v761_v36  ;;  %v473_v46 = vpop.xlane.xlu0 %472 }
 0x26a   : > { %v447_v42 = vmul.f32 %v763_v39, %v446_v38 }
 0x26c   : > { %v765_v43 = vpop.eup %764  ;;  %v448_v47 = vsub.f32 %v441_v41, %v447_v42 }
 0x26d   : > { %v461_v45 = vmul.f32 0.6931472, %v765_v43 }
 0x26e   : > { %v493_v51 = vsel %vm480_vm4, %v448_v47, 0.0 }
 0x26f   : > { %v474_v48 = vsub.f32 %v461_v45, %v473_v46  ;;  %v494_v52 = vsel %vm482_vm5, %v493_v51, 0.0 }
 0x271   : > { %v481_v49 = vsel %vm480_vm4, %v474_v48, 0.0 }
 0x272   : > { %v483_v50 = vsel %vm482_vm5, %v481_v49, 0.0 }
 0x273   : > { %484 = vadd.xlane.f32.xlu0 %v483_v50 }
 0x277   : > { %495 = vadd.xlane.f32.xlu0 %v494_v52 }
 0x300   : > { %v485_v53 = vpop.xlane.xlu0 %484 }
 0x301   : > { %v486_v54 = vrot.slane %v485_v53, 4 }
 0x303   : > { %v487_v55 = vadd.f32 %v486_v54, %v485_v53 }
 0x304   : > { %v496_v56 = vpop.xlane.xlu0 %495 }
 0x305   : > { %v488_v57 = vrot.slane %v487_v55, 2  ;;  %v497_v58 = vrot.slane %v496_v56, 4 }
 0x307   : > { %v498_v59 = vadd.f32 %v497_v58, %v496_v56  ;;  %v489_v60 = vadd.f32 %v488_v57, %v487_v55 }
 0x309   : > { %v499_v61 = vrot.slane %v498_v59, 2  ;;  %v490_v62 = vrot.slane %v489_v60, 1 }
 0x30b   : > { %v500_v63 = vadd.f32 %v499_v61, %v498_v59  ;;  %v491_v0 = vadd.f32 %v490_v62, %v489_v60 }
 0x30d   : > { %705 = vpush %v491_v0  ;;  %v501_v1 = vrot.slane %v500_v63, 1 }
 0x30f   : > { %v502_v2 = vadd.f32 %v501_v1, %v500_v63 }
 0x311   : > { %707 = vpush %v502_v2 }
 0x33e   : > { %s706_s19 = spop %705 }
 0x33f   : > { %v505_v3 = vstv %s706_s19 }
 0x340   : > { %v506_v5 = vsel %vm504_vm6, %v505_v3, 0.0 }
 0x342   : > { %s708_s20 = spop %707 }
 0x343   : > { %v508_v4 = vstv %s708_s20 }
 0x344   : > { %v509_v6 = vsel %vm507_vm7, %v508_v4, 0.0 }
 0x345   : > { %v510_v7 = vadd.f32 %v509_v6, %v506_v5 }
 0x347   : > { %511 = vst [vmem:[%s284_s21] sm:$0xff] %v510_v7 }
 0x348   : > { %779 = shalt.err (!%p776_p3)
}
 0x349   : > { %s780_s14 = scalar_lea.hbm %s1054_s12, 128  ;;  %s784_s18 = scalar_lea.hbm %s1102_s6, 256 }
 0x34a   : > { %p781_p4 = scmp.ne.s32.totalorder %s1054_s12, %s780_s14  ;;  %p785_p9 = scmp.lt.u32.totalorder %s1054_s12, %s1102_s6 }
 0x34b   : > { %p786_p10 = scmp.lt.u32.totalorder %s784_s18, %s780_s14  ;;  %p788_p12 = scmp.lt.u32.totalorder %s780_s14, %s1054_s12 }
 0x34c   : > { %p782_p7 = pnand %p781_p4, %p909_p5 }
 0x34d   : > { %p787_p11 = por %p786_p10, %p785_p9 }
 0x34e   : > { %p783_p8 = pneg %p782_p7 }
 0x34f   : > { %p789_p13 = por %p788_p12, %p787_p11 }
 0x351   : > { %p790_p0 = pnand %p789_p13, %p783_p8 }
 0x353   : > { %793 = shalt.err (!%p790_p0)
}
 0x354   : > { %709 = dma.vmem_to_hbm [thread:$0]  (%p909_p5), %s1056_s22, 128, %s1054_s12, %s513_s10  }
 0x355 PF: > { %p715_p1 = scmp.ge.s32.totalorder %s828_s26, 2  ;;  %s538_s20 = sand.u32 1, %s816_s23  }
 0x356   : > { %s539_s21 = scalar_lea.sflag [#allocation4], %s538_s20 }
 0x357   : > { %p712_p2 = pnand %p715_p1, %p913_p6 }
 0x359   : > { %811 = dma.done.wait (!%p712_p2), %s539_s21, 128  }
 0x35a   : > { %813 = vsyncadd (!%p712_p2), %s539_s21, 4294967168  ;;  %p17_p3 = scmp.ge.s32.totalorder %s896_s28, 4   ;;  %s1105_s23 = smov %s820_s24 }
 0x35b   : > { %s1106_s24 = smov %s824_s25  ;;  %s1107_s25 = smov %s907_s7 }
 0x35c   : > { %s1108_s26 = smov %s896_s28  ;;  %19 = sbr.rel (!%p17_p3) target bundleno = 5 (0x5), region = 88 }
 0x363   :  { %544 = vsyncpa [#allocation4], 1 }
 0x364   :  { %546 = vsyncpa [#allocation4 + $0x1], 1 }

</bundles_post_ra>
